<compile_context>
chip_gen: v7x
topology: tpu7x:2x2x1
jax: 0.10.0
libtpu: 0.0.40
codegen_flags: <defaults>
</compile_context>

<pallas_src>
import functools

import jax
import jax.numpy as jnp
from jax import lax
from jax.experimental import pallas as pl
from jax.experimental.pallas import tpu as pltpu

_LANE = 128      # TPU lane width (last-dim tiling unit)
_SUBLANE = 8     # sublane width (second-to-last dim tiling unit)


def _round_up(x, m):
    return ((x + m - 1) // m) * m


def _vmem_capacity_bytes():
    """Generation-aware VMEM capacity; conservative fallback if the query fails."""
    try:
        return int(pltpu.get_tpu_info().vmem_capacity_bytes)
    except Exception:
        return 64 << 20  # v7x per-TC VMEM (most conservative real value)


def _choose_bm(batch, block_m):
    """Pick an MXU-friendly M tile with bounded batch-padding waste."""
    batch_su = _round_up(batch, _SUBLANE)
    bm = min(block_m, batch_su)
    # Shrink the tile until padded-batch waste is <= ~12.5% (avoids up to ~2x wasted
    # MXU FLOPs / DMA for batches just above a multiple of block_m).
    while bm > 64:
        padded = _round_up(batch_su, bm)
        if (padded - batch_su) / padded <= 0.125:
            break
        bm //= 2
    # v7x megacore: make sure the parallel grid axis has >= 2 steps when the batch
    # is big enough, otherwise one TensorCore idles.
    if batch_su >= 256 and _round_up(batch_su, bm) // bm < 2:
        bm = max(128, bm // 2)
    return max(_SUBLANE, _round_up(bm, _SUBLANE))


# ---------------------------------------------------------------------------
# Parameter preparation (pad + cast ONCE, outside the per-call forward path)
# ---------------------------------------------------------------------------
def prepare_mlp_params(w_in, b_in, w_mid, b_mid):
    """Pad feature dims to lane multiples and cast weights to bf16 once.

    Args (already transposed vs. PyTorch nn.Linear layout, i.e. [in, out]):
      w_in:  [input_size, hidden] f32
      b_in:  [1, hidden] (or [hidden]) f32
      w_mid: [num_mid, hidden, hidden] f32
      b_mid: [num_mid, 1, hidden] (or [num_mid, hidden]) f32
    """
    input_size, hidden = w_in.shape
    num_mid = int(w_mid.shape[0])
    in_p = _round_up(input_size, _LANE)
    hid_p = _round_up(hidden, _LANE)
    n_mid = max(num_mid, 1)   # keep operands non-empty even if num_layers == 1

    bf16, f32 = jnp.bfloat16, jnp.float32
    w_in_p = jnp.zeros((in_p, hid_p), bf16).at[:input_size, :hidden].set(w_in.astype(bf16))
    b_in_p = jnp.zeros((1, hid_p), f32).at[:, :hidden].set(
        jnp.reshape(b_in, (1, hidden)).astype(f32))
    w_mid_p = jnp.zeros((n_mid, hid_p, hid_p), bf16)
    b_mid_p = jnp.zeros((n_mid, 1, hid_p), f32)
    if num_mid > 0:
        w_mid_p = w_mid_p.at[:num_mid, :hidden, :hidden].set(w_mid.astype(bf16))
        b_mid_p = b_mid_p.at[:num_mid, :, :hidden].set(
            jnp.reshape(b_mid, (num_mid, 1, hidden)).astype(f32))
    return dict(w_in=w_in_p, b_in=b_in_p, w_mid=w_mid_p, b_mid=b_mid_p,
                input_size=input_size, hidden=hidden, num_mid=num_mid)


# ---------------------------------------------------------------------------
# Kernels
# ---------------------------------------------------------------------------
def _mlp_kernel_resident(x_ref, w_in_ref, b_in_ref, w_mid_ref, b_mid_ref, o_ref,
                         *, num_mid, unroll):
    """All weights resident in VMEM; grid streams batch tiles only."""
    # Layer 0: Linear -> (dropout = identity) -> ReLU. bf16 MXU, f32 accumulate.
    acc = jnp.dot(x_ref[...], w_in_ref[...], preferred_element_type=jnp.float32)
    acc = jnp.maximum(acc + b_in_ref[...], 0.0)          # bias + ReLU in f32

    if num_mid > 0:
        def layer(l, acc):
            h = acc.astype(jnp.bfloat16)                  # downcast only at MXU boundary
            a = jnp.dot(h, w_mid_ref[l], preferred_element_type=jnp.float32)
            return jnp.maximum(a + b_mid_ref[l], 0.0)
        if unroll:
            for l in range(num_mid):
                acc = layer(l, acc)
        else:
            # Bound live ranges / vreg pressure for deep stacks.
            acc = lax.fori_loop(0, num_mid, layer, acc)

    o_ref[...] = acc.astype(o_ref.dtype)


def _mlp_kernel_streamed(x_ref, w_in_ref, b_in_ref, w_mid_ref, b_mid_ref, o_ref,
                         acc_ref):
    """Weights streamed one layer per grid step; f32 accumulator in VMEM scratch."""
    l = pl.program_id(1)
    last = pl.num_programs(1) - 1

    @pl.when(l == 0)
    def _():
        a = jnp.dot(x_ref[...], w_in_ref[...], preferred_element_type=jnp.float32)
        acc_ref[...] = jnp.maximum(a + b_in_ref[...], 0.0)

    @pl.when(l > 0)
    def _():
        h = acc_ref[...].astype(jnp.bfloat16)
        a = jnp.dot(h, w_mid_ref[0], preferred_element_type=jnp.float32)
        acc_ref[...] = jnp.maximum(a + b_mid_ref[0], 0.0)

    @pl.when(l == last)
    def _():
        o_ref[...] = acc_ref[...].astype(o_ref.dtype)


# ---------------------------------------------------------------------------
# Forward wrapper
# ---------------------------------------------------------------------------
def mlp_blocks_forward(x, params, *, block_m=256, weights_resident=None):
    """Fused forward pass of MLPBlocks (inference). Returns [batch, hidden] f32."""
    batch, input_size = x.shape
    assert input_size == params["input_size"]
    hidden, num_mid = params["hidden"], params["num_mid"]
    w_in_p, b_in_p = params["w_in"], params["b_in"]
    w_mid_p, b_mid_p = params["w_mid"], params["b_mid"]
    in_p, hid_p = w_in_p.shape
    n_mid = w_mid_p.shape[0]

    bm = _choose_bm(batch, block_m)
    batch_p = _round_up(batch, bm)
    n_bt = batch_p // bm

    bf16 = jnp.bfloat16
    x_p = jnp.zeros((batch_p, in_p), bf16).at[:batch, :input_size].set(x.astype(bf16))

    # --- VMEM budgeting (generation-aware) ---
    capacity = _vmem_capacity_bytes()
    budget = int(capacity * 0.85)                       # headroom for compiler scratch
    bytes_w_res = (w_in_p.size + w_mid_p.size) * 2 + (b_in_p.size + b_mid_p.size) * 4
    bytes_stream = 2 * (bm * in_p * 2 + bm * hid_p * 4)  # x/out tiles, double-buffered
    bytes_acc = 2 * bm * hid_p * 4                       # live f32 accumulator + temps
    headroom = 6 << 20
    resident_need = bytes_w_res + bytes_stream + bytes_acc + headroom

    if weights_resident is None:
        weights_resident = resident_need <= budget

    flops = 2 * batch_p * hid_p * (in_p + num_mid * hid_p)
    # Constant-index weight specs: single buffer (no point double-buffering a block
    # whose index never changes).
    resident_spec = functools.partial(pl.BlockSpec, pipeline_mode=pl.Buffered(1))

    if weights_resident:
        vmem_limit = int(min(budget, max(resident_need, 32 << 20)))
        cost = pl.CostEstimate(
            flops=int(flops), transcendentals=0,
            bytes_accessed=int(x_p.size * 2 + bytes_w_res + batch_p * hid_p * 4))
        kernel = functools.partial(_mlp_kernel_resident, num_mid=num_mid,
                                   unroll=num_mid <= 4)
        out_p = pl.pallas_call(
            kernel,
            out_shape=jax.ShapeDtypeStruct((batch_p, hid_p), jnp.float32),
            grid_spec=pltpu.PrefetchScalarGridSpec(
                num_scalar_prefetch=0,
                grid=(n_bt,),
                in_specs=[
                    pl.BlockSpec((bm, in_p), lambda i: (i, 0)),              # streamed x
                    resident_spec((in_p, hid_p), lambda i: (0, 0)),          # resident weights
                    resident_spec((1, hid_p), lambda i: (0, 0)),
                    resident_spec((n_mid, hid_p, hid_p), lambda i: (0, 0, 0)),
                    resident_spec((n_mid, 1, hid_p), lambda i: (0, 0, 0)),
                ],
                out_specs=pl.BlockSpec((bm, hid_p), lambda i: (i, 0)),
            ),
            compiler_params=pltpu.CompilerParams(
                dimension_semantics=("parallel",),
                vmem_limit_bytes=vmem_limit),
            cost_estimate=cost,
        )(x_p, w_in_p, b_in_p, w_mid_p, b_mid_p)
    else:
        # Streamed-weights path: trailing "arbitrary" layer axis, per-layer w_mid DMA,
        # f32 activation accumulator persists in VMEM scratch across layer steps.
        streamed_need = ((w_in_p.size * 2 + b_in_p.size * 4)            # resident, 1 buffer
                         + 2 * (hid_p * hid_p * 2 + hid_p * 4)          # per-layer w/b, 2 buffers
                         + bytes_stream + bm * hid_p * 4 + headroom)
        vmem_limit = int(min(budget, max(streamed_need, 32 << 20)))
        cost = pl.CostEstimate(
            flops=int(flops), transcendentals=0,
            bytes_accessed=int(x_p.size * 2 + w_in_p.size * 2 + b_in_p.size * 4
                               + n_bt * (w_mid_p.size * 2 + b_mid_p.size * 4)
                               + batch_p * hid_p * 4))
        out_p = pl.pallas_call(
            _mlp_kernel_streamed,
            out_shape=jax.ShapeDtypeStruct((batch_p, hid_p), jnp.float32),
            grid_spec=pltpu.PrefetchScalarGridSpec(
                num_scalar_prefetch=0,
                grid=(n_bt, num_mid + 1),
                in_specs=[
                    pl.BlockSpec((bm, in_p), lambda i, l: (i, 0)),
                    resident_spec((in_p, hid_p), lambda i, l: (0, 0)),
                    resident_spec((1, hid_p), lambda i, l: (0, 0)),
                    # One [hidden, hidden] layer per step; default double buffering
                    # overlaps layer l+1's weight DMA with layer l's matmul.
                    pl.BlockSpec((1, hid_p, hid_p),
                                 lambda i, l: (jnp.maximum(l - 1, 0), 0, 0)),
                    pl.BlockSpec((1, 1, hid_p),
                                 lambda i, l: (jnp.maximum(l - 1, 0), 0, 0)),
                ],
                out_specs=pl.BlockSpec((bm, hid_p), lambda i, l: (i, 0)),
                scratch_shapes=[pltpu.VMEM((bm, hid_p), jnp.float32)],
            ),
            compiler_params=pltpu.CompilerParams(
                dimension_semantics=("parallel", "arbitrary"),
                vmem_limit_bytes=vmem_limit),
            cost_estimate=cost,
        )(x_p, w_in_p, b_in_p, w_mid_p, b_mid_p)

    # strip batch / lane padding
    return out_p[:batch, :hidden]


# ---------------------------------------------------------------------------
# Reference + test harness
# ---------------------------------------------------------------------------
def _init_params(key, input_size, hidden_size, num_layers):
    """Deterministic init (uniform, similar in spirit to nn.Linear default)."""
    num_mid = num_layers - 1
    keys = jax.random.split(key, 4)
    lim_in = 1.0 / jnp.sqrt(jnp.float32(input_size))
    lim_h = 1.0 / jnp.sqrt(jnp.float32(hidden_size))
    # stored as [in, out] so the kernel can do x @ W directly
    w_in = jax.random.uniform(keys[0], (input_size, hidden_size), jnp.float32, -lim_in, lim_in)
    b_in = jax.random.uniform(keys[1], (1, hidden_size), jnp.float32, -lim_in, lim_in)
    w_mid = jax.random.uniform(keys[2], (num_mid, hidden_size, hidden_size),
                               jnp.float32, -lim_h, lim_h)
    b_mid = jax.random.uniform(keys[3], (num_mid, 1, hidden_size),
                               jnp.float32, -lim_h, lim_h)
    return w_in, b_in, w_mid, b_mid


def _reference_forward(x, w_in, b_in, w_mid, b_mid):
    """Pure-JAX reference with the same numerics (bf16 operands, f32 accumulate)."""
    bf16 = jnp.bfloat16
    acc = jnp.dot(x.astype(bf16), w_in.astype(bf16),
                  preferred_element_type=jnp.float32) + b_in
    acc = jnp.maximum(acc, 0.0)
    for l in range(w_mid.shape[0]):
        acc = jnp.dot(acc.astype(bf16), w_mid[l].astype(bf16),
                      preferred_element_type=jnp.float32) + b_mid[l]
        acc = jnp.maximum(acc, 0.0)
    return acc


if __name__ == "__main__":
    key = jax.random.PRNGKey(0)

    def run_case(k, batch, input_size, hidden_size, num_layers, weights_resident):
        kx, kp = jax.random.split(k)
        x = jax.random.normal(kx, (batch, input_size), jnp.float32)
        w_in, b_in, w_mid, b_mid = _init_params(kp, input_size, hidden_size, num_layers)
        params = prepare_mlp_params(w_in, b_in, w_mid, b_mid)
        out = jax.block_until_ready(
            mlp_blocks_forward(x, params, weights_resident=weights_resident))
        ref = _reference_forward(x, w_in, b_in, w_mid, b_mid)
        assert out.shape == (batch, hidden_size)
        assert out.dtype == jnp.float32
        assert jnp.allclose(out, ref, atol=2e-3, rtol=2e-3), (
            f"mismatch vs reference (resident={weights_resident})")

    k1, k2, k3 = jax.random.split(key, 3)
    # 1) default small case, auto-gated (weights resident, unrolled layer loop)
    run_case(k1, batch=16, input_size=32, hidden_size=32, num_layers=3,
             weights_resident=None)
    # 2) same case, streamed-weights path forced (per-layer grid axis + scratch acc)
    run_case(k2, batch=16, input_size=32, hidden_size=32, num_layers=3,
             weights_resident=False)
    # 3) non-aligned batch / feature dims, deeper stack (exercises fori_loop path)
    run_case(k3, batch=20, input_size=48, hidden_size=64, num_layers=6,
             weights_resident=None)

    print("KERNEL_OK")
</pallas_src>

<mosaic_0001>
module attributes {stable_mosaic.version = 11 : i64} {
  func.func @_mlp_kernel_resident(%arg0: i32, %arg1: memref<16x128xbf16, #tpu.memory_space<vmem>>, %arg2: memref<128x128xbf16, #tpu.memory_space<vmem>>, %arg3: memref<1x128xf32, #tpu.memory_space<vmem>>, %arg4: memref<2x128x128xbf16, #tpu.memory_space<vmem>>, %arg5: memref<2x1x128xf32, #tpu.memory_space<vmem>>, %arg6: memref<16x128xf32, #tpu.memory_space<vmem>>) attributes {dimension_semantics = [#tpu.dimension_semantics<parallel>], iteration_bounds = array<i64: 1>, scalar_prefetch = 0 : i64, scratch_operands = 0 : i64, tpu.core_type = #tpu.core_type<tc>, window_params = [{transform_indices = @transform_0, window_bounds = array<i64: 16, 128>}, {pipeline_mode = #tpu.pipeline_mode<synchronous>, transform_indices = @transform_1, window_bounds = array<i64: 128, 128>}, {pipeline_mode = #tpu.pipeline_mode<synchronous>, transform_indices = @transform_2, window_bounds = array<i64: 1, 128>}, {pipeline_mode = #tpu.pipeline_mode<synchronous>, transform_indices = @transform_3, window_bounds = array<i64: 2, 128, 128>}, {pipeline_mode = #tpu.pipeline_mode<synchronous>, transform_indices = @transform_4, window_bounds = array<i64: 2, 1, 128>}, {transform_indices = @transform_5, window_bounds = array<i64: 16, 128>}]} {
    %c0 = arith.constant 0 : index
    %c0_0 = arith.constant 0 : index
    %0 = vector.load %arg1[%c0, %c0_0] : memref<16x128xbf16, #tpu.memory_space<vmem>>, vector<16x128xbf16>
    %c0_1 = arith.constant 0 : index
    %c0_2 = arith.constant 0 : index
    %1 = vector.load %arg2[%c0_1, %c0_2] : memref<128x128xbf16, #tpu.memory_space<vmem>>, vector<128x128xbf16>
    %cst = arith.constant dense<0.000000e+00> : vector<16x128xf32>
    %2 = tpu.matmul %0, %1, %cst {dimension_numbers = #tpu.dot_dimension_numbers<[1], [0], [0], [1], [0, 0, 1, 1], [], []>} : vector<16x128xbf16>, vector<128x128xbf16>, vector<16x128xf32> -> vector<16x128xf32>
    %c0_3 = arith.constant 0 : index
    %c0_4 = arith.constant 0 : index
    %3 = vector.load %arg3[%c0_3, %c0_4] : memref<1x128xf32, #tpu.memory_space<vmem>>, vector<1x128xf32>
    %4 = vector.broadcast %3 : vector<1x128xf32> to vector<16x128xf32>
    %5 = arith.addf %2, %4 : vector<16x128xf32>
    %cst_5 = arith.constant 0.000000e+00 : f32
    %6 = vector.broadcast %cst_5 : f32 to vector<16x128xf32>
    %7 = arith.maximumf %5, %6 : vector<16x128xf32>
    %8 = arith.truncf %7 : vector<16x128xf32> to vector<16x128xbf16>
    %c0_6 = arith.constant 0 : index
    %c0_7 = arith.constant 0 : index
    %c0_8 = arith.constant 0 : index
    %9 = vector.load %arg4[%c0_6, %c0_7, %c0_8] : memref<2x128x128xbf16, #tpu.memory_space<vmem>>, vector<1x128x128xbf16>
    %10 = vector.shape_cast %9 : vector<1x128x128xbf16> to vector<128x128xbf16>
    %cst_9 = arith.constant dense<0.000000e+00> : vector<16x128xf32>
    %11 = tpu.matmul %8, %10, %cst_9 {dimension_numbers = #tpu.dot_dimension_numbers<[1], [0], [0], [1], [0, 0, 1, 1], [], []>} : vector<16x128xbf16>, vector<128x128xbf16>, vector<16x128xf32> -> vector<16x128xf32>
    %c0_10 = arith.constant 0 : index
    %c0_11 = arith.constant 0 : index
    %c0_12 = arith.constant 0 : index
    %12 = vector.load %arg5[%c0_10, %c0_11, %c0_12] : memref<2x1x128xf32, #tpu.memory_space<vmem>>, vector<1x1x128xf32>
    %13 = vector.shape_cast %12 : vector<1x1x128xf32> to vector<1x128xf32>
    %14 = vector.broadcast %13 : vector<1x128xf32> to vector<16x128xf32>
    %15 = arith.addf %11, %14 : vector<16x128xf32>
    %cst_13 = arith.constant 0.000000e+00 : f32
    %16 = vector.broadcast %cst_13 : f32 to vector<16x128xf32>
    %17 = arith.maximumf %15, %16 : vector<16x128xf32>
    %18 = arith.truncf %17 : vector<16x128xf32> to vector<16x128xbf16>
    %c1 = arith.constant 1 : index
    %c0_14 = arith.constant 0 : index
    %c0_15 = arith.constant 0 : index
    %19 = vector.load %arg4[%c1, %c0_14, %c0_15] : memref<2x128x128xbf16, #tpu.memory_space<vmem>>, vector<1x128x128xbf16>
    %20 = vector.shape_cast %19 : vector<1x128x128xbf16> to vector<128x128xbf16>
    %cst_16 = arith.constant dense<0.000000e+00> : vector<16x128xf32>
    %21 = tpu.matmul %18, %20, %cst_16 {dimension_numbers = #tpu.dot_dimension_numbers<[1], [0], [0], [1], [0, 0, 1, 1], [], []>} : vector<16x128xbf16>, vector<128x128xbf16>, vector<16x128xf32> -> vector<16x128xf32>
    %c1_17 = arith.constant 1 : index
    %c0_18 = arith.constant 0 : index
    %c0_19 = arith.constant 0 : index
    %22 = vector.load %arg5[%c1_17, %c0_18, %c0_19] : memref<2x1x128xf32, #tpu.memory_space<vmem>>, vector<1x1x128xf32>
    %23 = vector.shape_cast %22 : vector<1x1x128xf32> to vector<1x128xf32>
    %24 = vector.broadcast %23 : vector<1x128xf32> to vector<16x128xf32>
    %25 = arith.addf %21, %24 : vector<16x128xf32>
    %cst_20 = arith.constant 0.000000e+00 : f32
    %26 = vector.broadcast %cst_20 : f32 to vector<16x128xf32>
    %27 = arith.maximumf %25, %26 : vector<16x128xf32>
    %c0_21 = arith.constant 0 : index
    %c0_22 = arith.constant 0 : index
    %28 = vector.load %arg6[%c0_21, %c0_22] : memref<16x128xf32, #tpu.memory_space<vmem>>, vector<16x128xf32>
    tpu.vector_store %arg6[%c0_21, %c0_22], %27 {strides = array<i32>} : memref<16x128xf32, #tpu.memory_space<vmem>>, vector<16x128xf32>,
    return
  }
  func.func @transform_0(%arg0: i32) -> (i32, i32) {
    %c0_i32 = arith.constant 0 : i32
    %c0_i32_0 = arith.constant 0 : i32
    return %arg0, %c0_i32 : i32, i32
  }
  func.func @transform_1(%arg0: i32) -> (i32, i32) {
    %c0_i32 = arith.constant 0 : i32
    %c0_i32_0 = arith.constant 0 : i32
    %c0_i32_1 = arith.constant 0 : i32
    return %c0_i32, %c0_i32_0 : i32, i32
  }
  func.func @transform_2(%arg0: i32) -> (i32, i32) {
    %c0_i32 = arith.constant 0 : i32
    %c0_i32_0 = arith.constant 0 : i32
    %c0_i32_1 = arith.constant 0 : i32
    return %c0_i32, %c0_i32_0 : i32, i32
  }
  func.func @transform_3(%arg0: i32) -> (i32, i32, i32) {
    %c0_i32 = arith.constant 0 : i32
    %c0_i32_0 = arith.constant 0 : i32
    %c0_i32_1 = arith.constant 0 : i32
    %c0_i32_2 = arith.constant 0 : i32
    return %c0_i32, %c0_i32_0, %c0_i32_1 : i32, i32, i32
  }
  func.func @transform_4(%arg0: i32) -> (i32, i32, i32) {
    %c0_i32 = arith.constant 0 : i32
    %c0_i32_0 = arith.constant 0 : i32
    %c0_i32_1 = arith.constant 0 : i32
    %c0_i32_2 = arith.constant 0 : i32
    return %c0_i32, %c0_i32_0, %c0_i32_1 : i32, i32, i32
  }
  func.func @transform_5(%arg0: i32) -> (i32, i32) {
    %c0_i32 = arith.constant 0 : i32
    %c0_i32_0 = arith.constant 0 : i32
    return %arg0, %c0_i32 : i32, i32
  }
}

</mosaic_0001>

<bundles_post_ra>
// kernel: tpu_custom_call.1
= control target key start
LH: loop header
LB: loop body
LE: loop exit
PB: predicated region body
PF: predicated region fallthrough
CT: control target
= control target key end

     0   :  { %10 = vsyncpa [#allocation3], 0  ;;  %s825_s0 = inlined_call_operand.hbm [shape: bf16[16,128], index: 0, kind: input, shape index: {}]   ;;  %s826_s1 = inlined_call_operand.hbm [shape: bf16[128,128], index: 1, kind: input, shape index: {}]   ;;  %s827_s2 = inlined_call_operand.vmem [shape: f32[1,128], index: 2, kind: input, shape index: {}]   ;;  %s828_s3 = inlined_call_operand.hbm [shape: bf16[2,128,128], index: 3, kind: input, shape index: {}]   ;;  %s829_s4 = inlined_call_operand.vmem [shape: f32[2,1,128], index: 4, kind: input, shape index: {}]   ;;  %s830_s5 = inlined_call_operand.hbm [shape: f32[16,128], index: 5, kind: output, shape index: {}]  }
   0x1   :  { %11 = vsyncpa [#allocation6], 0 }
   0x2   :  { %12 = vsyncpa [#allocation4], 0  ;;  %s682_s18 = smov [#allocation5]   ;;  %s683_s20 = smov [#allocation2]  }
   0x3   :  { %s30_s19 = sshll.u32 %s682_s18, 4  ;;  %s18_s21 = sshll.u32 %s683_s20, 4  ;;  %s31_s19 = int_to_ptr.vmem [resolvable:$true] %s30_s19  ;;  %s722_s21 = int_to_ptr.vmem [resolvable:$true] %s18_s21 }
   0x4   :  { %s588_s24 = scalar_lea.hbm %s826_s1, 1024 }
   0x5   :  { %p589_p0 = scmp.ne.s32.totalorder %s826_s1, %s588_s24  ;;  %p592_p1 = scmp.lt.u32.totalorder %s588_s24, %s826_s1 }
   0x7   :  { %p594_p2 = pnand %p592_p1, %p589_p0 }
   0x9   :  { %597 = shalt.err (!%p594_p2)
}
   0xa   :  { %s598_s29 = scalar_lea.vmem %s31_s19, 1024  ;;  %p603_p4 = scmp.lt.s32.totalorder %s31_s19, %s31_s19 }
   0xb   :  { %p599_p3 = scmp.ne.s32.totalorder %s31_s19, %s598_s29  ;;  %p604_p5 = scmp.lt.s32.totalorder %s598_s29, %s598_s29 }
   0xd   :  { %p605_p6 = por %p604_p5, %p603_p4 }
   0xf   :  { %p606_p7 = pnand %p605_p6, %p599_p3 }
  0x11   :  { %609 = shalt.err (!%p606_p7)
}
  0x12   :  { %s684_s30 = smov 64   ;;  %s685_s6 = smov 4  }
  0x13   :  { %36 = dma.hbm_to_vmem [thread:$0]  %s826_s1, 1024, %s31_s19, [#allocation6], %s684_s30, %s684_s30, %s685_s6  }
  0x14   :  { %s610_s11 = scalar_lea.hbm %s825_s0, 128 }
  0x15   :  { %p611_p8 = scmp.ne.s32.totalorder %s825_s0, %s610_s11  ;;  %p614_p9 = scmp.lt.u32.totalorder %s610_s11, %s825_s0 }
  0x17   :  { %p616_p10 = pnand %p614_p9, %p611_p8 }
  0x19   :  { %619 = shalt.err (!%p616_p10)
}
  0x1a   :  { %s620_s16 = scalar_lea.vmem %s722_s21, 128  ;;  %p625_p12 = scmp.lt.s32.totalorder %s722_s21, %s722_s21 }
  0x1b   :  { %p621_p11 = scmp.ne.s32.totalorder %s722_s21, %s620_s16  ;;  %p626_p13 = scmp.lt.s32.totalorder %s620_s16, %s620_s16 }
  0x1d   :  { %p627_p0 = por %p626_p13, %p625_p12 }
  0x1f   :  { %p628_p1 = pnand %p627_p0, %p621_p11 }
  0x21   :  { %631 = shalt.err (!%p628_p1)
}
  0x22   :  { %24 = dma.hbm_to_vmem [thread:$0]  %s825_s0, 128, %s722_s21, [#allocation3], %s684_s30, %s684_s30, %s685_s6  }
  0x23   :  { %s686_s18 = smov [#allocation7]   ;;  %s632_s23 = scalar_lea.hbm %s828_s3, 2048 }
  0x24   :  { %s44_s19 = sshll.u32 %s686_s18, 4  ;;  %p633_p2 = scmp.ne.s32.totalorder %s828_s3, %s632_s23  ;;  %s45_s19 = int_to_ptr.vmem [resolvable:$true] %s44_s19 }
  0x25   :  { %p636_p3 = scmp.lt.u32.totalorder %s632_s23, %s828_s3 }
  0x27   :  { %p638_p4 = pnand %p636_p3, %p633_p2 }
  0x29   :  { %641 = shalt.err (!%p638_p4)
}
  0x2a   :  { %s642_s28 = scalar_lea.vmem %s45_s19, 2048  ;;  %p647_p6 = scmp.lt.s32.totalorder %s45_s19, %s45_s19 }
  0x2b   :  { %p643_p5 = scmp.ne.s32.totalorder %s45_s19, %s642_s28  ;;  %p648_p7 = scmp.lt.s32.totalorder %s642_s28, %s642_s28 }
  0x2d   :  { %p649_p8 = por %p648_p7, %p647_p6 }
  0x2f   :  { %p650_p9 = pnand %p649_p8, %p643_p5 }
  0x31   :  { %653 = shalt.err (!%p650_p9)
}
  0x32   :  { %50 = dma.hbm_to_vmem [thread:$0]  %s828_s3, 2048, %s45_s19, [#allocation6], %s684_s30, %s684_s30, %s685_s6  }
  0x33   :  { %676 = dma.done.wait [#allocation3], 128  }
  0x34   :  { %677 = vsyncadd [#allocation3], 4294967168 }
  0x35   :  { %678 = dma.done.wait [#allocation6], 3072  }
  0x36   :  { %679 = vsyncadd [#allocation6], 4294964224  ;;  %v687_v0 = vmov 0.0   ;;  %vm688_vm0 = vmmov 0   ;;  %v563_v1 = vld [vmem:[#allocation5] sm:$0xff]   ;;  %v564_v2 = vld [vmem:[#allocation5 + $0x8] sm:$0xff]  }
  0x37   :  { %493 = vmatprep.subr.bf16.mxu0 %v687_v0  ;;  %509 = vmatprep.mubr.msk.bf16.mxu0 %vm688_vm0, %v687_v0  ;;  %v565_v3 = vld [vmem:[#allocation5 + $0x10] sm:$0xff]   ;;  %v572_v4 = vld [vmem:[#allocation7] sm:$0xff]   ;;  %v566_v5 = vld [vmem:[#allocation5 + $0x18] sm:$0xff]   ;;  %s689_s8 = smov [#allocation8]  }
  0x38   :  { %513 = vmatprep.subr.bf16.mxu1 %v687_v0  ;;  %529 = vmatprep.mubr.msk.bf16.mxu1 %vm688_vm0, %v687_v0  ;;  %v573_v6 = vld [vmem:[#allocation7 + $0x8] sm:$0xff]   ;;  %v567_v7 = vld [vmem:[#allocation5 + $0x20] sm:$0xff]   ;;  %v574_v8 = vld [vmem:[#allocation7 + $0x10] sm:$0xff]   ;;  %s424_s9 = sshll.u32 %s689_s8, 4  ;;  %s425_s9 = int_to_ptr.vmem [resolvable:$true] %s424_s9 }
  0x39   :  { %494 = vmatpush3.bf16.msra.mxu0 %v563_v1  ;;  %514 = vmatpush3.bf16.msra.mxu1 %v572_v4  ;;  %v568_v9 = vld [vmem:[#allocation5 + $0x28] sm:$0xff]   ;;  %v575_v10 = vld [vmem:[#allocation7 + $0x18] sm:$0xff]   ;;  %v569_v11 = vld [vmem:[#allocation5 + $0x30] sm:$0xff]   ;;  %s654_s10 = scalar_lea.vmem %s425_s9, 256  ;;  %p659_p11 = scmp.lt.s32.totalorder %s425_s9, %s425_s9 }
  0x3a   :  { %495 = vmatprep.subr.bf16.mxu0 %v687_v0  ;;  %515 = vmatprep.subr.bf16.mxu1 %v687_v0  ;;  %v576_v12 = vld [vmem:[#allocation7 + $0x20] sm:$0xff]   ;;  %v570_v13 = vld [vmem:[#allocation5 + $0x38] sm:$0xff]   ;;  %v577_v14 = vld [vmem:[#allocation7 + $0x28] sm:$0xff]   ;;  %p655_p10 = scmp.ne.s32.totalorder %s425_s9, %s654_s10  ;;  %p660_p12 = scmp.lt.s32.totalorder %s654_s10, %s654_s10 }
  0x3b   :  { %v571_v15 = vld [vmem:[#allocation2] sm:$0xff]   ;;  %v578_v16 = vld [vmem:[#allocation7 + $0x30] sm:$0xff]   ;;  %v580_v18 = vld [vmem:[#allocation7 + $0x40] sm:$0xff]  }
  0x3c   :  { %v579_v17 = vld [vmem:[#allocation7 + $0x38] sm:$0xff]   ;;  %v581_v19 = vld [vmem:[#allocation7 + $0x48] sm:$0xff]   ;;  %v582_v20 = vld [vmem:[#allocation7 + $0x50] sm:$0xff]   ;;  %p661_p13 = por %p660_p12, %p659_p11 }
  0x3d   :  { %496 = vmatpush3.bf16.msra.mxu0 %v564_v2  ;;  %516 = vmatpush3.bf16.msra.mxu1 %v573_v6  ;;  %v583_v21 = vld [vmem:[#allocation7 + $0x58] sm:$0xff]   ;;  %v584_v22 = vld [vmem:[#allocation7 + $0x60] sm:$0xff]   ;;  %v585_v23 = vld [vmem:[#allocation7 + $0x68] sm:$0xff]  }
  0x3e   :  { %497 = vmatprep.subr.bf16.mxu0 %v687_v0  ;;  %517 = vmatprep.subr.bf16.mxu1 %v687_v0  ;;  %v437_v24 = vld [vmem:[%s827_s2] ss:$0 sm:$0xff]  ;;  %v586_v34 = vld [vmem:[#allocation7 + $0x70] sm:$0xff]   ;;  %v457_v46 = vld [vmem:[%s829_s4 + $0x1] ss:$0 sm:$0xff]  ;;  %p662_p0 = pnand %p661_p13, %p655_p10 }
  0x3f   :  { %v587_v35 = vld [vmem:[#allocation7 + $0x78] sm:$0xff]  }
  0x40   :  { %v447_v36 = vld [vmem:[%s829_s4] ss:$0 sm:$0xff] }
  0x41   :  { %498 = vmatpush3.bf16.msra.mxu0 %v565_v3  ;;  %518 = vmatpush3.bf16.msra.mxu1 %v574_v8 }
  0x42   :  { %499 = vmatprep.subr.bf16.mxu0 %v687_v0  ;;  %519 = vmatprep.subr.bf16.mxu1 %v687_v0 }
  0x45   :  { %500 = vmatpush3.bf16.msra.mxu0 %v566_v5  ;;  %520 = vmatpush3.bf16.msra.mxu1 %v575_v10 }
  0x46   :  { %501 = vmatprep.subr.bf16.mxu0 %v687_v0  ;;  %521 = vmatprep.subr.bf16.mxu1 %v687_v0 }
  0x49   :  { %502 = vmatpush3.bf16.msra.mxu0 %v567_v7  ;;  %522 = vmatpush3.bf16.msra.mxu1 %v576_v12 }
  0x4a   :  { %503 = vmatprep.subr.bf16.mxu0 %v687_v0  ;;  %523 = vmatprep.subr.bf16.mxu1 %v687_v0 }
  0x4d   :  { %504 = vmatpush3.bf16.msra.mxu0 %v568_v9  ;;  %524 = vmatpush3.bf16.msra.mxu1 %v577_v14 }
  0x4e   :  { %505 = vmatprep.subr.bf16.mxu0 %v687_v0  ;;  %525 = vmatprep.subr.bf16.mxu1 %v687_v0 }
  0x51   :  { %506 = vmatpush3.bf16.msra.mxu0 %v569_v11  ;;  %526 = vmatpush3.bf16.msra.mxu1 %v578_v16 }
  0x52   :  { %507 = vmatprep.subr.bf16.mxu0 %v687_v0  ;;  %527 = vmatprep.subr.bf16.mxu1 %v687_v0 }
  0x55   :  { %508 = vmatpush3.bf16.msra.mxu0 %v570_v13  ;;  %528 = vmatpush3.bf16.msra.mxu1 %v579_v17 }
  0x56   :  { %533 = vmatprep.subr.bf16.mxu0 %v687_v0 }
  0x58   :  { %510 = vmatmul.mubr.bf16.vlgmr.msra.gmra.mrb[0].mxu0 %v571_v15 }
  0x59   :  { %549 = vmatprep.mubr.msk.bf16.mxu0 %vm688_vm0, %v687_v0  ;;  %534 = vmatpush3.bf16.msra.mxu0 %v580_v18 }
  0x5a   :  { %535 = vmatprep.subr.bf16.mxu0 %v687_v0 }
  0x5d   :  { %536 = vmatpush3.bf16.msra.mxu0 %v581_v19 }
  0x5e   :  { %537 = vmatprep.subr.bf16.mxu0 %v687_v0 }
  0x61   :  { %538 = vmatpush3.bf16.msra.mxu0 %v582_v20 }
  0x62   :  { %539 = vmatprep.subr.bf16.mxu0 %v687_v0 }
  0x65   :  { %540 = vmatpush3.bf16.msra.mxu0 %v583_v21 }
  0x66   :  { %541 = vmatprep.subr.bf16.mxu0 %v687_v0 }
  0x69   :  { %542 = vmatpush3.bf16.msra.mxu0 %v584_v22 }
  0x6a   :  { %543 = vmatprep.subr.bf16.mxu0 %v687_v0 }
  0x6d   :  { %544 = vmatpush3.bf16.msra.mxu0 %v585_v23 }
  0x6e   :  { %545 = vmatprep.subr.bf16.mxu0 %v687_v0 }
  0x71   :  { %546 = vmatpush3.bf16.msra.mxu0 %v586_v34 }
  0x72   :  { %547 = vmatprep.subr.bf16.mxu0 %v687_v0 }
  0x75   :  { %548 = vmatpush3.bf16.msra.mxu0 %v587_v35 }
 0x12b   :  { %v176_v25 = vpop.f32.mrb[0].mxu0 }
 0x12c   :  { %v177_v26 = vadd.f32 %v437_v24, %v176_v25  ;;  %v511_v27 = vpop.f32.mrb[1].mxu0 }
 0x12d   :  { %v179_v28 = vpop.f32.mrb[2].mxu0 }
 0x12e   :  { %v180_v29 = vadd.f32 %v437_v24, %v179_v28  ;;  %v512_v30 = vpop.f32.mrb[3].mxu0  ;;  %v183_v31 = vmax.f32 %v177_v26, 0.0 }
 0x130   :  { %v184_v32 = vmax.f32 %v180_v29, 0.0 }
 0x132   :  { %v185_v33 = vpack.c.bf16 %v184_v32, %v183_v31 }
 0x134   :  { %530 = vmatmul.mubr.bf16.vlgmr.msra.gmra.mrb[0].mxu1 %v185_v33 }
 0x207   :  { %v291_v37 = vpop.f32.mrb[0].mxu1 }
 0x208   :  { %v292_v38 = vadd.f32 %v447_v36, %v291_v37  ;;  %v531_v39 = vpop.f32.mrb[1].mxu1 }
 0x209   :  { %v294_v40 = vpop.f32.mrb[2].mxu1 }
 0x20a   :  { %v295_v41 = vadd.f32 %v447_v36, %v294_v40  ;;  %v532_v42 = vpop.f32.mrb[3].mxu1  ;;  %v298_v43 = vmax.f32 %v292_v38, 0.0 }
 0x20c   :  { %v299_v44 = vmax.f32 %v295_v41, 0.0 }
 0x20e   :  { %v300_v45 = vpack.c.bf16 %v299_v44, %v298_v43 }
 0x210   :  { %550 = vmatmul.mubr.bf16.vlgmr.msra.gmra.mrb[4].mxu0 %v300_v45 }
 0x2e3   :  { %v408_v47 = vpop.f32.mrb[4].mxu0 }
 0x2e4   :  { %v409_v48 = vadd.f32 %v457_v46, %v408_v47  ;;  %v551_v49 = vpop.f32.mrb[5].mxu0 }
 0x2e5   :  { %v411_v50 = vpop.f32.mrb[6].mxu0 }
 0x2e6   :  { %v415_v51 = vmax.f32 %v409_v48, 0.0  ;;  %v412_v52 = vadd.f32 %v457_v46, %v411_v50  ;;  %v552_v53 = vpop.f32.mrb[7].mxu0 }
 0x2e8   :  { %417 = vst [vmem:[#allocation8] sm:$0xff] %v415_v51  ;;  %v416_v54 = vmax.f32 %v412_v52, 0.0 }
 0x2ea   :  { %418 = vst [vmem:[#allocation8 + $0x8] sm:$0xff] %v416_v54 }
 0x2eb   :  { %665 = shalt.err (!%p662_p0)
}
 0x2ec   :  { %s666_s12 = scalar_lea.hbm %s830_s5, 256 }
 0x2ed   :  { %p667_p1 = scmp.ne.s32.totalorder %s830_s5, %s666_s12  ;;  %p670_p2 = scmp.lt.u32.totalorder %s666_s12, %s830_s5 }
 0x2ef   :  { %p672_p3 = pnand %p670_p2, %p667_p1 }
 0x2f1   :  { %675 = shalt.err (!%p672_p3)
}
 0x2f2   :  { %s690_s1 = smov 128   ;;  %s691_s17 = smov 8  }
 0x2f3   :  { %430 = dma.vmem_to_hbm [thread:$0]  %s425_s9, 256, %s830_s5, [#allocation4], %s690_s1, %s690_s1, %s691_s17  }
 0x2f4   :  { %680 = dma.done.wait [#allocation4], 256  }
 0x2f5   :  { %681 = vsyncadd [#allocation4], 4294967040 }
 0x2f6   :  { %434 = vsyncpa [#allocation3], 1 }
 0x2f7   :  { %435 = vsyncpa [#allocation6], 1 }
 0x2f8   :  { %436 = vsyncpa [#allocation4], 1 }

</bundles_post_ra>
